<compile_context>
chip_gen: v6e
topology: v6e:2x2x1
jax: 0.10.0
libtpu: 0.0.40
codegen_flags: <defaults>
</compile_context>

<pallas_src>
import functools

import jax
import jax.numpy as jnp
from jax import lax
from jax.experimental import pallas as pl
from jax.experimental.pallas import tpu as pltpu


# ---------------------------------------------------------------------------
# Kernel
# ---------------------------------------------------------------------------
def decoder_kernel(num_layers, *refs):
    """refs = (e1, e2, w0, b0, w1, b1, ..., out).

    e1/e2 : [TB, in_dim]   f32 (natural HBM layout: batch on sublanes)
    w_i   : [out_i, in_i]  PyTorch nn.Linear layout (bf16 if pre-cast in wrapper)
    b_i   : [out_i, 1]     f32
    out   : [out_last, TB] f32 -- batch on the LANE axis (lane-dense stores)
    """
    e1_ref, e2_ref = refs[0], refs[1]
    out_ref = refs[-1]
    param_refs = refs[2:-1]

    # Elementwise product of the two embeddings (VPU, f32 -- v5e has no bf16 VPU).
    x = e1_ref[...] * e2_ref[...]                       # [TB, in_dim]

    # Unrolled (Linear -> tanh) stack.  Layer 0 contracts W's in-dim against
    # x's feature axis and emits [out, TB]; from then on the batch tile lives
    # on the lane axis, so bias add / tanh / the final store use full vregs.
    for i in range(num_layers):
        w = param_refs[2 * i][...]                      # [out_i, in_i]
        b = param_refs[2 * i + 1][...]                  # [out_i, 1]
        xm = x if x.dtype == w.dtype else x.astype(w.dtype)   # cast only at MXU boundary
        x_caxis = 1 if i == 0 else 0                    # layer 0: x=[TB,in]; later: x=[in,TB]
        y = lax.dot_general(
            w, xm,
            dimension_numbers=(((1,), (x_caxis,)), ((), ())),
            preferred_element_type=jnp.float32)         # [out_i, TB], f32 accumulate
        x = jnp.tanh(y + b)                             # VPU add + EUP tanh, f32

    out_ref[...] = x.astype(out_ref.dtype)


# ---------------------------------------------------------------------------
# Wrapper
# ---------------------------------------------------------------------------
def _pallas_decoder(e1, e2, flat_params, param_specs, *, tb, rows, in_dim, out_dim):
    """Run the fused decoder over the first `rows` rows of e1/e2 (tb divides rows)."""
    kernel = functools.partial(decoder_kernel, len(param_specs) // 2)
    return pl.pallas_call(
        kernel,
        out_shape=jax.ShapeDtypeStruct((out_dim, rows), jnp.float32),
        grid=(rows // tb,),
        in_specs=[pl.BlockSpec((tb, in_dim), lambda i: (i, 0)),
                  pl.BlockSpec((tb, in_dim), lambda i: (i, 0))] + param_specs,
        out_specs=pl.BlockSpec((out_dim, tb), lambda i: (0, i)),
        compiler_params=pltpu.CompilerParams(
            dimension_semantics=("parallel",),  # batch grid shards over 2 TCs on v7x
            vmem_limit_bytes=32 << 20,          # ample for tb<=8192; < v7x's 64 MiB VMEM
        ),
    )(e1, e2, *flat_params)


def _pick_batch_tile(B, block_rows):
    """Batch tile = lane width of the output block."""
    if B <= 256:
        return B                      # single full-extent block (sidesteps (8,128) rule)
    # Lane-dense (multiple of 128) and at least 2 grid steps so the "parallel"
    # batch axis can shard across both TensorCores on v7x.
    tb = min(block_rows, (B // 2) // 128 * 128)
    return max(tb, 128)


def decoder_forward(embedding1, embedding2, params, *, block_rows=4096,
                    matmul_dtype=None):
    """params: list of (weight[out, in], bias[out, 1]) in application order
    (PyTorch nn.Linear layout).  Returns [B, struct[-1]] float32.

    block_rows   : max batch tile (multiple of 128 recommended).  Large tiles
                   amortize per-grid-step pipeline overhead; weights stay
                   VMEM-resident across all steps via constant index_maps.
    matmul_dtype : e.g. jnp.bfloat16 to feed the MXU in bf16 (recommended on
                   v6e/v7x).  Weights are cast once here; accumulation and all
                   VPU/EUP work stay f32.
    """
    B, in_dim = embedding1.shape
    out_dim = params[-1][0].shape[0]

    flat, param_specs = [], []
    for w, b in params:
        if matmul_dtype is not None and w.dtype != matmul_dtype:
            w = w.astype(matmul_dtype)          # pre-cast once; halves resident weight VMEM
        flat.append(w)
        flat.append(b)
        # Constant index_map -> weights/biases loaded once, VMEM-resident all steps.
        param_specs.append(pl.BlockSpec(w.shape, lambda i: (0, 0)))
        param_specs.append(pl.BlockSpec(b.shape, lambda i: (0, 0)))

    tb = _pick_batch_tile(B, block_rows)
    rows_main = (B // tb) * tb                   # covered by the tiled call -- no jnp.pad copy

    outs = []
    if rows_main > 0:
        outs.append(_pallas_decoder(embedding1, embedding2, flat, param_specs,
                                    tb=tb, rows=rows_main,
                                    in_dim=in_dim, out_dim=out_dim))
    if rows_main < B:
        # Ragged tail (< tb rows): one extra single-block call on a tiny slice
        # instead of padding both embeddings in HBM.
        e1_t = embedding1[rows_main:]
        e2_t = embedding2[rows_main:]
        outs.append(_pallas_decoder(e1_t, e2_t, flat, param_specs,
                                    tb=B - rows_main, rows=B - rows_main,
                                    in_dim=in_dim, out_dim=out_dim))

    out_t = outs[0] if len(outs) == 1 else jnp.concatenate(outs, axis=1)
    return out_t.T                               # tiny [out_dim, B] -> [B, out_dim]


# ---------------------------------------------------------------------------
# Parameter init (mirrors Decoder.init_model_weight) and pure-JAX reference
# ---------------------------------------------------------------------------
def xavier_uniform(key, out_dim, in_dim):
    # Matches nn.init.xavier_uniform_ on a PyTorch Linear weight of shape (out, in).
    bound = (6.0 / (in_dim + out_dim)) ** 0.5
    return jax.random.uniform(key, (out_dim, in_dim), jnp.float32, -bound, bound)


def init_decoder_params(key, struct):
    """Weights kept in PyTorch [out, in] layout; biases as [out, 1] so they
    broadcast over the lane (batch) axis inside the kernel."""
    params = []

    # decoder_1: Linear(struct[0], struct[0])
    key, kw, kb = jax.random.split(key, 3)
    w = xavier_uniform(kw, struct[0], struct[0])
    b = jax.random.uniform(kb, (struct[0], 1), jnp.float32, -0.5, 0.5)
    params.append((w, b))

    # decoder[i]: Linear(struct[i], struct[i+1])
    for i in range(len(struct) - 1):
        key, kw, kb = jax.random.split(key, 3)
        w = xavier_uniform(kw, struct[i + 1], struct[i])
        b = jax.random.uniform(kb, (struct[i + 1], 1), jnp.float32, -0.5, 0.5)
        params.append((w, b))

    return params


def decoder_reference(embedding1, embedding2, params):
    """Pure-JAX reference of the PyTorch forward pass."""
    x = embedding1 * embedding2
    for w, b in params:
        x = jnp.tanh(x @ w.T + b[:, 0])
    return x


# ---------------------------------------------------------------------------
# Demo / correctness check
# ---------------------------------------------------------------------------
if __name__ == "__main__":
    # Small config consistent with the module: config.struct = [32, 64, 16]
    struct = [32, 64, 16]

    key = jax.random.PRNGKey(0)
    key, kp = jax.random.split(key)
    params = init_decoder_params(kp, struct)

    # --- Case 1: tiny batch -> single full-extent block (grid of 1) ---
    B1 = 8
    key, k1, k2 = jax.random.split(key, 3)
    e1 = jax.random.normal(k1, (B1, struct[0]), jnp.float32)
    e2 = jax.random.normal(k2, (B1, struct[0]), jnp.float32)
    out1 = jax.block_until_ready(decoder_forward(e1, e2, params))
    ref1 = decoder_reference(e1, e2, params)
    assert out1.shape == (B1, struct[-1])
    assert jnp.allclose(out1, ref1, atol=1e-5, rtol=1e-5), "mismatch vs reference (batch=8)"

    # --- Case 2: tiled path (two 128-wide lane-dense batch tiles) + ragged tail
    #     handled by a second small call (no jnp.pad HBM copy) ---
    B2 = 320
    key, k3, k4 = jax.random.split(key, 3)
    e1b = jax.random.normal(k3, (B2, struct[0]), jnp.float32)
    e2b = jax.random.normal(k4, (B2, struct[0]), jnp.float32)
    out2 = jax.block_until_ready(decoder_forward(e1b, e2b, params, block_rows=128))
    ref2 = decoder_reference(e1b, e2b, params)
    assert out2.shape == (B2, struct[-1])
    assert jnp.allclose(out2, ref2, atol=1e-5, rtol=1e-5), "mismatch vs reference (tiled)"

    # --- Case 3: bf16 at the MXU boundary (v6e/v7x recommendation); f32
    #     accumulate + f32 VPU/EUP keeps the error at bf16-input level, so a
    #     relaxed tolerance vs the f32 reference is expected. ---
    out3 = jax.block_until_ready(
        decoder_forward(e1b, e2b, params, block_rows=128, matmul_dtype=jnp.bfloat16))
    assert out3.shape == (B2, struct[-1])
    assert jnp.allclose(out3, ref2, atol=1e-1, rtol=0.0), "mismatch vs reference (bf16 MXU)"

    print("KERNEL_OK")
</pallas_src>

<mosaic_0001>
module attributes {stable_mosaic.version = 11 : i64} {
  func.func @decoder_kernel(%arg0: i32, %arg1: memref<8x32xf32, #tpu.memory_space<vmem>>, %arg2: memref<8x32xf32, #tpu.memory_space<vmem>>, %arg3: memref<32x32xf32, #tpu.memory_space<vmem>>, %arg4: memref<32x1xf32, #tpu.memory_space<vmem>>, %arg5: memref<64x32xf32, #tpu.memory_space<vmem>>, %arg6: memref<64x1xf32, #tpu.memory_space<vmem>>, %arg7: memref<16x64xf32, #tpu.memory_space<vmem>>, %arg8: memref<16x1xf32, #tpu.memory_space<vmem>>, %arg9: memref<16x8xf32, #tpu.memory_space<vmem>>) attributes {dimension_semantics = [#tpu.dimension_semantics<parallel>], iteration_bounds = array<i64: 1>, scalar_prefetch = 0 : i64, scratch_operands = 0 : i64, tpu.core_type = #tpu.core_type<tc>, window_params = [{transform_indices = @transform_0, window_bounds = array<i64: 8, 32>}, {transform_indices = @transform_1, window_bounds = array<i64: 8, 32>}, {pipeline_mode = #tpu.pipeline_mode<synchronous>, transform_indices = @transform_2, window_bounds = array<i64: 32, 32>}, {pipeline_mode = #tpu.pipeline_mode<synchronous>, transform_indices = @transform_3, window_bounds = array<i64: 32, 1>}, {pipeline_mode = #tpu.pipeline_mode<synchronous>, transform_indices = @transform_4, window_bounds = array<i64: 64, 32>}, {pipeline_mode = #tpu.pipeline_mode<synchronous>, transform_indices = @transform_5, window_bounds = array<i64: 64, 1>}, {pipeline_mode = #tpu.pipeline_mode<synchronous>, transform_indices = @transform_6, window_bounds = array<i64: 16, 64>}, {pipeline_mode = #tpu.pipeline_mode<synchronous>, transform_indices = @transform_7, window_bounds = array<i64: 16, 1>}, {transform_indices = @transform_8, window_bounds = array<i64: 16, 8>}]} {
    %c0 = arith.constant 0 : index
    %c0_0 = arith.constant 0 : index
    %0 = vector.load %arg1[%c0, %c0_0] : memref<8x32xf32, #tpu.memory_space<vmem>>, vector<8x32xf32>
    %c0_1 = arith.constant 0 : index
    %c0_2 = arith.constant 0 : index
    %1 = vector.load %arg2[%c0_1, %c0_2] : memref<8x32xf32, #tpu.memory_space<vmem>>, vector<8x32xf32>
    %2 = arith.mulf %0, %1 : vector<8x32xf32>
    %c0_3 = arith.constant 0 : index
    %c0_4 = arith.constant 0 : index
    %3 = vector.load %arg3[%c0_3, %c0_4] : memref<32x32xf32, #tpu.memory_space<vmem>>, vector<32x32xf32>
    %c0_5 = arith.constant 0 : index
    %c0_6 = arith.constant 0 : index
    %4 = vector.load %arg4[%c0_5, %c0_6] : memref<32x1xf32, #tpu.memory_space<vmem>>, vector<32x1xf32>
    %cst = arith.constant dense<0.000000e+00> : vector<32x8xf32>
    %5 = tpu.matmul %3, %2, %cst {dimension_numbers = #tpu.dot_dimension_numbers<[1], [1], [0], [0], [0, 0, 1, 0], [], []>} : vector<32x32xf32>, vector<8x32xf32>, vector<32x8xf32> -> vector<32x8xf32>
    %6 = vector.broadcast %4 : vector<32x1xf32> to vector<32x8xf32>
    %7 = arith.addf %5, %6 : vector<32x8xf32>
    %8 = math.tanh %7 : vector<32x8xf32>
    %c0_7 = arith.constant 0 : index
    %c0_8 = arith.constant 0 : index
    %9 = vector.load %arg5[%c0_7, %c0_8] : memref<64x32xf32, #tpu.memory_space<vmem>>, vector<64x32xf32>
    %c0_9 = arith.constant 0 : index
    %c0_10 = arith.constant 0 : index
    %10 = vector.load %arg6[%c0_9, %c0_10] : memref<64x1xf32, #tpu.memory_space<vmem>>, vector<64x1xf32>
    %cst_11 = arith.constant dense<0.000000e+00> : vector<64x8xf32>
    %11 = tpu.matmul %9, %8, %cst_11 {dimension_numbers = #tpu.dot_dimension_numbers<[1], [0], [0], [1], [0, 0, 1, 1], [], []>} : vector<64x32xf32>, vector<32x8xf32>, vector<64x8xf32> -> vector<64x8xf32>
    %12 = vector.broadcast %10 : vector<64x1xf32> to vector<64x8xf32>
    %13 = arith.addf %11, %12 : vector<64x8xf32>
    %14 = math.tanh %13 : vector<64x8xf32>
    %c0_12 = arith.constant 0 : index
    %c0_13 = arith.constant 0 : index
    %15 = vector.load %arg7[%c0_12, %c0_13] : memref<16x64xf32, #tpu.memory_space<vmem>>, vector<16x64xf32>
    %c0_14 = arith.constant 0 : index
    %c0_15 = arith.constant 0 : index
    %16 = vector.load %arg8[%c0_14, %c0_15] : memref<16x1xf32, #tpu.memory_space<vmem>>, vector<16x1xf32>
    %cst_16 = arith.constant dense<0.000000e+00> : vector<16x8xf32>
    %17 = tpu.matmul %15, %14, %cst_16 {dimension_numbers = #tpu.dot_dimension_numbers<[1], [0], [0], [1], [0, 0, 1, 1], [], []>} : vector<16x64xf32>, vector<64x8xf32>, vector<16x8xf32> -> vector<16x8xf32>
    %18 = vector.broadcast %16 : vector<16x1xf32> to vector<16x8xf32>
    %19 = arith.addf %17, %18 : vector<16x8xf32>
    %20 = math.tanh %19 : vector<16x8xf32>
    %c0_17 = arith.constant 0 : index
    %c0_18 = arith.constant 0 : index
    %21 = vector.load %arg9[%c0_17, %c0_18] : memref<16x8xf32, #tpu.memory_space<vmem>>, vector<16x8xf32>
    tpu.vector_store %arg9[%c0_17, %c0_18], %20 {strides = array<i32>} : memref<16x8xf32, #tpu.memory_space<vmem>>, vector<16x8xf32>,
    return
  }
  func.func @transform_0(%arg0: i32) -> (i32, i32) {
    %c0_i32 = arith.constant 0 : i32
    %c0_i32_0 = arith.constant 0 : i32
    return %arg0, %c0_i32 : i32, i32
  }
  func.func @transform_1(%arg0: i32) -> (i32, i32) {
    %c0_i32 = arith.constant 0 : i32
    %c0_i32_0 = arith.constant 0 : i32
    return %arg0, %c0_i32 : i32, i32
  }
  func.func @transform_2(%arg0: i32) -> (i32, i32) {
    %c0_i32 = arith.constant 0 : i32
    %c0_i32_0 = arith.constant 0 : i32
    %c0_i32_1 = arith.constant 0 : i32
    return %c0_i32, %c0_i32_0 : i32, i32
  }
  func.func @transform_3(%arg0: i32) -> (i32, i32) {
    %c0_i32 = arith.constant 0 : i32
    %c0_i32_0 = arith.constant 0 : i32
    %c0_i32_1 = arith.constant 0 : i32
    return %c0_i32, %c0_i32_0 : i32, i32
  }
  func.func @transform_4(%arg0: i32) -> (i32, i32) {
    %c0_i32 = arith.constant 0 : i32
    %c0_i32_0 = arith.constant 0 : i32
    %c0_i32_1 = arith.constant 0 : i32
    return %c0_i32, %c0_i32_0 : i32, i32
  }
  func.func @transform_5(%arg0: i32) -> (i32, i32) {
    %c0_i32 = arith.constant 0 : i32
    %c0_i32_0 = arith.constant 0 : i32
    %c0_i32_1 = arith.constant 0 : i32
    return %c0_i32, %c0_i32_0 : i32, i32
  }
  func.func @transform_6(%arg0: i32) -> (i32, i32) {
    %c0_i32 = arith.constant 0 : i32
    %c0_i32_0 = arith.constant 0 : i32
    %c0_i32_1 = arith.constant 0 : i32
    return %c0_i32, %c0_i32_0 : i32, i32
  }
  func.func @transform_7(%arg0: i32) -> (i32, i32) {
    %c0_i32 = arith.constant 0 : i32
    %c0_i32_0 = arith.constant 0 : i32
    %c0_i32_1 = arith.constant 0 : i32
    return %c0_i32, %c0_i32_0 : i32, i32
  }
  func.func @transform_8(%arg0: i32) -> (i32, i32) {
    %c0_i32 = arith.constant 0 : i32
    %c0_i32_0 = arith.constant 0 : i32
    return %c0_i32, %arg0 : i32, i32
  }
}

</mosaic_0001>

<bundles_post_ra>
// kernel: tpu_custom_call.1
= control target key start
LH: loop header
LB: loop body
LE: loop exit
PB: predicated region body
PF: predicated region fallthrough
CT: control target
= control target key end

     0   :  { %vm60_vm0 = vcmask 261120   ;;  %v583_v3 = vmov 0   ;;  %vm372_vm1 = vcmask 523264   ;;  %vm456_vm2 = vcmask 64512   ;;  %s741_s0 = inlined_call_operand.vmem [shape: f32[8,32], index: 0, kind: input, shape index: {}]   ;;  %s742_s1 = inlined_call_operand.vmem [shape: f32[8,32], index: 1, kind: input, shape index: {}]   ;;  %s743_s2 = inlined_call_operand.vmem [shape: f32[32,32], index: 2, kind: input, shape index: {}]   ;;  %s744_s3 = inlined_call_operand.vmem [shape: f32[32,1], index: 3, kind: input, shape index: {}]   ;;  %s745_s5 = inlined_call_operand.vmem [shape: f32[64,1], index: 5, kind: input, shape index: {}]   ;;  %s746_s7 = inlined_call_operand.vmem [shape: f32[16,1], index: 7, kind: input, shape index: {}]   ;;  %s747_s4 = inlined_call_operand.vmem [shape: f32[64,32], index: 4, kind: input, shape index: {}]   ;;  %s748_s6 = inlined_call_operand.vmem [shape: f32[16,64], index: 6, kind: input, shape index: {}]   ;;  %s749_s8 = inlined_call_operand.vmem [shape: f32[16,8], index: 8, kind: output, shape index: {}]  }
   0x1   :  { %v29_v0 = vld [vmem:[%s741_s0] sm:$0xff]  ;;  %553 = vset.pattern.permute.xlu0 %v583_v3  ;;  %554 = vset.pattern.permute.xlu1 %v583_v3  ;;  %v39_v5 = vld [vmem:[%s744_s3 + $0x18] sm:$0xff]  ;;  %v37_v6 = vld [vmem:[%s744_s3 + $0x8] sm:$0xff] }
   0x2   :  { %v30_v1 = vld [vmem:[%s742_s1] sm:$0xff]  ;;  %57 = vperm.xlu0 %553, %v39_v5   ;;  %v33_v7 = vld [vmem:[%s743_s2 + $0x8] sm:$0xff]  ;;  %v38_v8 = vld [vmem:[%s744_s3 + $0x10] sm:$0xff]  ;;  %47 = vperm.xlu1 %554, %v37_v6  }
   0x3   :  { %v32_v2 = vld [vmem:[%s743_s2] sm:$0xff]  ;;  %v31_v4 = vmul.f32 %v30_v1, %v29_v0  ;;  %v34_v9 = vld [vmem:[%s743_s2 + $0x10] sm:$0xff]  ;;  %v35_v11 = vld [vmem:[%s743_s2 + $0x18] sm:$0xff] }
   0x4   :  { %507 = vmatprep.mubr.msk.f32.mxu0 %vm60_vm0, %v32_v2  ;;  %v36_v10 = vld [vmem:[%s744_s3] sm:$0xff]  ;;  %v180_v12 = vld [vmem:[%s745_s5 + $0x38] sm:$0xff]  ;;  %v179_v13 = vld [vmem:[%s745_s5 + $0x30] sm:$0xff] }
   0x5   :  { %505 = vmatprep.subr.msk.mxu0 %vm60_vm0, %v31_v4  ;;  %v178_v14 = vld [vmem:[%s745_s5 + $0x28] sm:$0xff]  ;;  %v177_v15 = vld [vmem:[%s745_s5 + $0x20] sm:$0xff]  ;;  %v176_v16 = vld [vmem:[%s745_s5 + $0x18] sm:$0xff] }
   0x6   :  { %506 = vmatpush3.xpose.msk.msra.mxu0 %vm60_vm0, %v31_v4  ;;  %52 = vperm.xlu0 %553, %v38_v8   ;;  %v175_v17 = vld [vmem:[%s745_s5 + $0x10] sm:$0xff]  ;;  %v174_v18 = vld [vmem:[%s745_s5 + $0x8] sm:$0xff]  ;;  %v173_v19 = vld [vmem:[%s745_s5] sm:$0xff] }
   0x7   :  { %42 = vperm.xlu1 %554, %v36_v10   ;;  %v360_v20 = vld [vmem:[%s746_s7] sm:$0xff]  ;;  %v361_v21 = vld [vmem:[%s746_s7 + $0x8] sm:$0xff]  ;;  %v167_v40 = vld [vmem:[%s747_s4 + $0x10] sm:$0xff] }
   0x8   :  { %v165_v22 = vld [vmem:[%s747_s4] sm:$0xff]  ;;  %v166_v39 = vld [vmem:[%s747_s4 + $0x8] sm:$0xff]  ;;  %v168_v41 = vld [vmem:[%s747_s4 + $0x18] sm:$0xff] }
   0x9   :  { %508 = vmatmul.mubr.msk.f32.vlgmr.msra.gmra.mxu0 %vm60_vm0, %v33_v7  ;;  %521 = vmatprep.mubr.msk.f32.mxu1 %vm60_vm0, %v165_v22  ;;  %v169_v42 = vld [vmem:[%s747_s4 + $0x20] sm:$0xff]  ;;  %v170_v43 = vld [vmem:[%s747_s4 + $0x28] sm:$0xff]  ;;  %v171_v44 = vld [vmem:[%s747_s4 + $0x30] sm:$0xff] }
   0xa   :  { %510 = vmatprep.mubr.msk.f32.mxu0 %vm60_vm0, %v34_v9  ;;  %218 = vperm.xlu0 %553, %v180_v12   ;;  %v172_v45 = vld [vmem:[%s747_s4 + $0x38] sm:$0xff]  ;;  %v358_v46 = vld [vmem:[%s748_s6] sm:$0xff] }
   0xb   :  { %213 = vperm.xlu1 %554, %v179_v13  }
   0xd   :  { %511 = vmatmul.mubr.msk.f32.gmra.mxu0 %vm60_vm0, %v35_v11 }
   0xe   :  { %208 = vperm.xlu0 %553, %v178_v14   ;;  %549 = vmatprep.mubr.msk.f32.mxu0 %vm372_vm1, %v358_v46 }
   0xf   :  { %203 = vperm.xlu1 %554, %v177_v15   ;;  %v359_v15 = vld [vmem:[%s748_s6 + $0x8] sm:$0xff] }
  0x12   :  { %198 = vperm.xlu0 %553, %v176_v16  }
  0x13   :  { %193 = vperm.xlu1 %554, %v175_v17  }
  0x16   :  { %188 = vperm.xlu0 %553, %v174_v18  }
  0x17   :  { %183 = vperm.xlu1 %554, %v173_v19  }
  0x1a   :  { %364 = vperm.xlu0 %553, %v360_v20  }
  0x1b   :  { %369 = vperm.xlu1 %554, %v361_v21  }
  0x7d   :  { %v58_v23 = vpop.permute.xlu0 %57  ;;  %v48_v25 = vpop.permute.xlu1 %47 }
  0x81   :  { %v53_v29 = vpop.permute.xlu0 %52 }
  0x82   :  { %v43_v33 = vpop.permute.xlu1 %42 }
  0x85   :  { %v219_v49 = vpop.permute.xlu0 %218 }
  0x86   :  { %v214_v51 = vpop.permute.xlu1 %213 }
  0x89   :  { %v209_v54 = vpop.permute.xlu0 %208 }
  0x8a   :  { %v204_v56 = vpop.permute.xlu1 %203 }
  0x8d   :  { %v199_v62 = vpop.permute.xlu0 %198 }
  0x8e   :  { %v194_v0 = vpop.permute.xlu1 %193 }
  0x91   :  { %v189_v3 = vpop.permute.xlu0 %188 }
  0x92   :  { %v184_v5 = vpop.permute.xlu1 %183 }
  0x95   :  { %v365_v19 = vpop.permute.xlu0 %364 }
  0x96   :  { %v370_v16 = vpop.permute.xlu1 %369 }
  0xc9   :  { %v509_v24 = vpop.f32.mrf.mxu0 }
  0xca   :  { %v148_v31 = vadd.f32 %v509_v24, %v48_v25 }
  0xcb   :  { %v142_v26 = vpop.f32.mrf.mxu0 }
  0xcc   :  { %v143_v34 = vadd.f32 %v142_v26, %v43_v33 }
  0xcd   :  { %v512_v27 = vpop.f32.mrf.mxu0 }
  0xce   :  { %v158_v28 = vadd.f32 %v512_v27, %v58_v23 }
  0xcf   :  { %v152_v30 = vpop.f32.mrf.mxu0 }
  0xd0   :  { %555 = vtanh.f32 %v158_v28  ;;  %v153_v32 = vadd.f32 %v152_v30, %v53_v29 }
  0xd2   :  { %557 = vtanh.f32 %v153_v32 }
  0xd3   :  { %559 = vtanh.f32 %v148_v31 }
  0xd4   :  { %561 = vtanh.f32 %v143_v34 }
  0xdd   :  { %v556_v35 = vpop.eup %555 }
  0xde   :  { %513 = vmatprep.subr.mxu1 %v556_v35 }
  0xdf   :  { %v558_v36 = vpop.eup %557  ;;  %514 = vmatpush3.msra.mxu1 %v556_v35 }
  0xe0   :  { %515 = vmatprep.subr.mxu1 %v558_v36  ;;  %v560_v37 = vpop.eup %559 }
  0xe1   :  { %516 = vmatpush3.msra.mxu1 %v558_v36  ;;  %v562_v38 = vpop.eup %561 }
  0xe2   :  { %517 = vmatprep.subr.mxu1 %v560_v37 }
  0xe3   :  { %518 = vmatpush3.msra.mxu1 %v560_v37 }
  0xe4   :  { %519 = vmatprep.subr.mxu1 %v562_v38 }
  0xe5   :  { %520 = vmatpush3.msra.mxu1 %v562_v38 }
  0xe6   :  { %522 = vmatmul.mubr.msk.f32.vlgmr.msra.gmra.mxu1 %vm60_vm0, %v166_v39 }
  0xe7   :  { %524 = vmatprep.mubr.msk.f32.mxu1 %vm60_vm0, %v167_v40 }
  0xea   :  { %525 = vmatmul.mubr.msk.f32.gmra.mxu1 %vm60_vm0, %v168_v41 }
  0xeb   :  { %527 = vmatprep.mubr.msk.f32.mxu1 %vm60_vm0, %v169_v42 }
  0xee   :  { %528 = vmatmul.mubr.msk.f32.gmra.mxu1 %vm60_vm0, %v170_v43 }
  0xef   :  { %530 = vmatprep.mubr.msk.f32.mxu1 %vm60_vm0, %v171_v44 }
  0xf2   :  { %531 = vmatmul.mubr.msk.f32.gmra.mxu1 %vm60_vm0, %v172_v45 }
 0x1a6   :  { %v523_v47 = vpop.f32.mrf.mxu1 }
 0x1a7   :  { %v317_v4 = vadd.f32 %v523_v47, %v189_v3 }
 0x1a8   :  { %v311_v48 = vpop.f32.mrf.mxu1 }
 0x1a9   :  { %v312_v6 = vadd.f32 %v311_v48, %v184_v5 }
 0x1aa   :  { %v526_v50 = vpop.f32.mrf.mxu1 }
 0x1ab   :  { %v327_v1 = vadd.f32 %v526_v50, %v199_v62 }
 0x1ac   :  { %v321_v52 = vpop.f32.mrf.mxu1 }
 0x1ad   :  { %v322_v2 = vadd.f32 %v321_v52, %v194_v0 }
 0x1ae   :  { %v529_v53 = vpop.f32.mrf.mxu1 }
 0x1af   :  { %v337_v60 = vadd.f32 %v529_v53, %v209_v54 }
 0x1b0   :  { %v331_v55 = vpop.f32.mrf.mxu1 }
 0x1b1   :  { %v332_v63 = vadd.f32 %v331_v55, %v204_v56 }
 0x1b2   :  { %v532_v57 = vpop.f32.mrf.mxu1 }
 0x1b3   :  { %v347_v58 = vadd.f32 %v532_v57, %v219_v49 }
 0x1b4   :  { %v341_v59 = vpop.f32.mrf.mxu1 }
 0x1b5   :  { %563 = vtanh.f32 %v347_v58  ;;  %v342_v61 = vadd.f32 %v341_v59, %v214_v51 }
 0x1b7   :  { %565 = vtanh.f32 %v342_v61 }
 0x1b8   :  { %567 = vtanh.f32 %v337_v60 }
 0x1b9   :  { %569 = vtanh.f32 %v332_v63 }
 0x1ba   :  { %571 = vtanh.f32 %v327_v1 }
 0x1bb   :  { %573 = vtanh.f32 %v322_v2 }
 0x1bc   :  { %575 = vtanh.f32 %v317_v4 }
 0x1bd   :  { %577 = vtanh.f32 %v312_v6 }
 0x1c2   :  { %v564_v7 = vpop.eup %563 }
 0x1c3   :  { %533 = vmatprep.subr.mxu0 %v564_v7 }
 0x1c4   :  { %v566_v8 = vpop.eup %565  ;;  %534 = vmatpush3.msra.mxu0 %v564_v7 }
 0x1c5   :  { %535 = vmatprep.subr.mxu0 %v566_v8  ;;  %v568_v9 = vpop.eup %567 }
 0x1c6   :  { %536 = vmatpush3.msra.mxu0 %v566_v8  ;;  %v570_v10 = vpop.eup %569 }
 0x1c7   :  { %537 = vmatprep.subr.mxu0 %v568_v9  ;;  %v572_v11 = vpop.eup %571 }
 0x1c8   :  { %538 = vmatpush3.msra.mxu0 %v568_v9  ;;  %v574_v12 = vpop.eup %573 }
 0x1c9   :  { %539 = vmatprep.subr.mxu0 %v570_v10  ;;  %v576_v13 = vpop.eup %575 }
 0x1ca   :  { %540 = vmatpush3.msra.mxu0 %v570_v10  ;;  %v578_v14 = vpop.eup %577 }
 0x1cb   :  { %541 = vmatprep.subr.mxu0 %v572_v11 }
 0x1cc   :  { %542 = vmatpush3.msra.mxu0 %v572_v11 }
 0x1cd   :  { %543 = vmatprep.subr.mxu0 %v574_v12 }
 0x1ce   :  { %544 = vmatpush3.msra.mxu0 %v574_v12 }
 0x1cf   :  { %545 = vmatprep.subr.mxu0 %v576_v13 }
 0x1d0   :  { %546 = vmatpush3.msra.mxu0 %v576_v13 }
 0x1d1   :  { %547 = vmatprep.subr.mxu0 %v578_v14 }
 0x1d2   :  { %548 = vmatpush3.msra.mxu0 %v578_v14 }
 0x1d3   :  { %550 = vmatmul.mubr.msk.f32.vlgmr.msra.gmra.mxu0 %vm372_vm1, %v359_v15 }
 0x293   :  { %v551_v17 = vpop.f32.mrf.mxu0 }
 0x294   :  { %v451_v18 = vadd.f32 %v551_v17, %v370_v16 }
 0x295   :  { %v445_v20 = vpop.f32.mrf.mxu0 }
 0x296   :  { %579 = vtanh.f32 %v451_v18  ;;  %v446_v21 = vadd.f32 %v445_v20, %v365_v19 }
 0x298   :  { %581 = vtanh.f32 %v446_v21 }
 0x2a3   :  { %v580_v22 = vpop.eup %579 }
 0x2a4   :  { %458 = vst.msk [vmem:[%s749_s8 + $0x8] sm:$0xff] %vm456_vm2, %v580_v22 }
 0x2a5   :  { %v582_v23 = vpop.eup %581 }
 0x2a6   :  { %457 = vst.msk [vmem:[%s749_s8] sm:$0xff] %vm456_vm2, %v582_v23 }

</bundles_post_ra>
